<compile_context>
chip_gen: v7x
topology: tpu7x:2x2x1
jax: 0.10.0
libtpu: 0.0.40
codegen_flags: <defaults>
</compile_context>

<pallas_src>
import functools

import jax
import jax.numpy as jnp
from jax.experimental import pallas as pl
from jax.experimental.pallas import tpu as pltpu

LN_EPS = 1e-5
VMEM_BUDGET = 40 << 20   # working-set budget; leaves headroom under v7x's 64 MiB


def _round_up(n, m):
    return ((n + m - 1) // m) * m


def _vmem_bytes(tb, in_p, h_p, o_p):
    weights = 2 * (in_p * h_p + h_p * h_p + h_p * o_p)  # bf16, single-buffered
    biases = 4 * (3 * h_p + o_p)                        # f32 biases + LN affine
    x_tiles = 2 * tb * in_p * 4                         # f32 input, double-buffered
    o_tiles = 2 * tb * o_p * 2                          # bf16 output, double-buffered
    interm = 4 * tb * h_p * 4                           # h, z, d, zn f32 live values
    return weights + biases + x_tiles + o_tiles + interm


def mlp_kernel(x_ref, w0_ref, b0_ref, w1_ref, b1_ref, g_ref, bt_ref,
               w2_ref, b2_ref, o_ref, *, hidden_dim):
    # x tile arrives f32; cast to bf16 in-kernel (VPU cast is hidden under the
    # MXU/DMA) instead of paying a separate wrapper-side cast pass over HBM.
    x = x_ref[...].astype(jnp.bfloat16)

    # --- input Linear: (TB, IN) @ (IN, H) + (1, H), f32 accumulate ---
    h = jnp.dot(x, w0_ref[...], preferred_element_type=jnp.float32) + b0_ref[...]

    # --- residual block: Linear -> LayerNorm -> ReLU -> Dropout(id) -> +res ---
    z = jnp.dot(h.astype(jnp.bfloat16), w1_ref[...],
                preferred_element_type=jnp.float32) + b1_ref[...]

    # LayerNorm statistics over the REAL hidden columns. Padded lanes of z are
    # exactly zero (all pads are zero-filled), so sum(z) is exact; divide by
    # the real hidden_dim. Variance is two-pass with padded lanes masked out.
    h_pad = z.shape[-1]
    inv_h = 1.0 / float(hidden_dim)
    mu = jnp.sum(z, axis=-1, keepdims=True) * inv_h
    d = z - mu
    if hidden_dim != h_pad:
        col = jax.lax.broadcasted_iota(jnp.int32, (1, h_pad), 1)
        d = jnp.where(col < hidden_dim, d, 0.0)
    var = jnp.sum(d * d, axis=-1, keepdims=True) * inv_h
    zn = d * jax.lax.rsqrt(var + LN_EPS)
    zn = zn * g_ref[...] + bt_ref[...]   # padded gamma/beta are 0 -> lanes stay 0
    zn = jnp.maximum(zn, 0.0)
    # TODO(synk): Dropout is identity here (inference / eval() semantics);
    # training-mode masking would use pltpu.prng_seed + pltpu.stateful_bernoulli.
    h = zn + h                            # residual add in f32

    # --- output Linear: (TB, H) @ (H, O_pad) + (1, O_pad) ---
    out = jnp.dot(h.astype(jnp.bfloat16), w2_ref[...],
                  preferred_element_type=jnp.float32) + b2_ref[...]
    o_ref[...] = out.astype(o_ref.dtype)  # bf16 writeback (padded lanes cheap)


def mymodel_forward(x, params):
    (w0, b0, w1, b1, g, bt, w2, b2) = params
    batch, in_dim = x.shape
    hidden_dim = w0.shape[1]
    out_dim = w2.shape[1]

    # Lane-dense padding of every contraction / lane dimension.
    in_p = _round_up(in_dim, 128)
    h_p = _round_up(hidden_dim, 128)
    o_p = _round_up(out_dim, 128)

    # Batch tile: multiple of 16 (bf16 row packing), aim for >= 4 grid steps so
    # the "parallel" axis can shard across two TensorCores (v7x), cap at 512,
    # and shrink until the VMEM working set fits the budget.
    tb = min(512, max(16, _round_up(pl.cdiv(batch, 4), 16)))
    while tb > 16 and _vmem_bytes(tb, in_p, h_p, o_p) > VMEM_BUDGET:
        tb = max(16, _round_up(tb // 2, 16))
    # NOTE: if the resident weights alone exceed the budget (very large H),
    # the right fix is an inner pltpu.emit_pipeline over H/O blocks instead of
    # keeping all three weight matrices VMEM-resident.
    b_pad = _round_up(batch, tb)

    def pad2(a, rows, cols):
        return jnp.pad(a, ((0, rows - a.shape[0]), (0, cols - a.shape[1])))

    # All pads MUST be zero-filled: the LayerNorm-stat / padded-lane invariant
    # in the kernel depends on it.
    x_p = pad2(x, b_pad, in_p)                       # stays f32; cast in-kernel
    w0_p = pad2(w0, in_p, h_p).astype(jnp.bfloat16)
    b0_p = pad2(b0, 1, h_p)
    w1_p = pad2(w1, h_p, h_p).astype(jnp.bfloat16)
    b1_p = pad2(b1, 1, h_p)
    g_p = pad2(g, 1, h_p)
    bt_p = pad2(bt, 1, h_p)
    w2_p = pad2(w2, h_p, o_p).astype(jnp.bfloat16)
    b2_p = pad2(b2, 1, o_p)

    weight_bytes = 2 * (in_p * h_p + h_p * h_p + h_p * o_p) + 4 * (3 * h_p + o_p)
    cost = pl.CostEstimate(
        flops=2 * b_pad * (in_p * h_p + h_p * h_p + h_p * o_p) + 12 * b_pad * h_p,
        transcendentals=b_pad,
        bytes_accessed=b_pad * in_p * 4 + weight_bytes + b_pad * o_p * 2,
    )
    vmem_limit = int(min(64 << 20, max(2 * _vmem_bytes(tb, in_p, h_p, o_p), 16 << 20)))

    def build(single_buffer):
        if single_buffer:
            # Grid-invariant blocks: one buffer is enough, second is VMEM waste.
            resident = lambda a: pl.BlockSpec(a.shape, lambda i: (0, 0),
                                              pipeline_mode=pl.Buffered(1))
        else:
            resident = lambda a: pl.BlockSpec(a.shape, lambda i: (0, 0))
        return pl.pallas_call(
            functools.partial(mlp_kernel, hidden_dim=hidden_dim),
            out_shape=jax.ShapeDtypeStruct((b_pad, o_p), jnp.bfloat16),
            grid=(b_pad // tb,),
            in_specs=[pl.BlockSpec((tb, in_p), lambda i: (i, 0)),
                      resident(w0_p), resident(b0_p),
                      resident(w1_p), resident(b1_p),
                      resident(g_p), resident(bt_p),
                      resident(w2_p), resident(b2_p)],
            out_specs=pl.BlockSpec((tb, o_p), lambda i: (i, 0)),
            compiler_params=pltpu.CompilerParams(
                dimension_semantics=("parallel",),
                vmem_limit_bytes=vmem_limit),
            cost_estimate=cost,
        )

    args = (x_p, w0_p, b0_p, w1_p, b1_p, g_p, bt_p, w2_p, b2_p)
    try:
        out_p = jax.block_until_ready(build(True)(*args))
    except Exception:
        # pipeline_mode=pl.Buffered(1) not supported on this jax version:
        # fall back to default (double-buffered) resident specs.
        out_p = build(False)(*args)

    # Slice off batch/output padding; upcast only the real outputs to f32.
    return out_p[:batch, :out_dim].astype(jnp.float32)


def mymodel_forward_ref(x, params):
    (w0, b0, w1, b1, g, bt, w2, b2) = params
    h = x @ w0 + b0
    z = h @ w1 + b1
    mu = jnp.mean(z, axis=-1, keepdims=True)
    var = jnp.mean((z - mu) ** 2, axis=-1, keepdims=True)
    zn = (z - mu) / jnp.sqrt(var + LN_EPS)
    zn = zn * g + bt
    zn = jnp.maximum(zn, 0.0)
    h = zn + h
    return h @ w2 + b2


def init_params(key, input_dim, hidden_dim, output_dim):
    ks = jax.random.split(key, 6)

    def linear(kw, kb, fan_in, fan_out):
        bound = 1.0 / jnp.sqrt(fan_in)
        w = jax.random.uniform(kw, (fan_in, fan_out), jnp.float32, -bound, bound)
        b = jax.random.uniform(kb, (1, fan_out), jnp.float32, -bound, bound)
        return w, b

    w0, b0 = linear(ks[0], ks[1], input_dim, hidden_dim)   # input Linear
    w1, b1 = linear(ks[2], ks[3], hidden_dim, hidden_dim)  # Layer.linear
    g = jnp.ones((1, hidden_dim), jnp.float32)             # LayerNorm weight
    bt = jnp.zeros((1, hidden_dim), jnp.float32)           # LayerNorm bias
    w2, b2 = linear(ks[4], ks[5], hidden_dim, output_dim)  # output Linear
    return (w0, b0, w1, b1, g, bt, w2, b2)


if __name__ == "__main__":
    key = jax.random.PRNGKey(0)
    kx, kp = jax.random.split(key)

    batch, input_dim, hidden_dim, output_dim = 8, 16, 32, 8
    x = jax.random.normal(kx, (batch, input_dim), jnp.float32)
    params = init_params(kp, input_dim, hidden_dim, output_dim)

    out = jax.block_until_ready(mymodel_forward(x, params))
    ref = mymodel_forward_ref(x, params)

    assert out.shape == (batch, output_dim)
    assert out.dtype == jnp.float32
    # bf16 MXU operands + bf16 output writeback (f32 accumulation) -> loosened
    # tolerance vs the f32 reference.
    assert jnp.allclose(out, ref, atol=5e-2, rtol=5e-2), \
        float(jnp.max(jnp.abs(out - ref)))

    print("KERNEL_OK")
</pallas_src>

<mosaic_0001>
module attributes {stable_mosaic.version = 11 : i64} {
  func.func @mlp_kernel(%arg0: i32, %arg1: memref<16x128xf32, #tpu.memory_space<vmem>>, %arg2: memref<128x128xbf16, #tpu.memory_space<vmem>>, %arg3: memref<1x128xf32, #tpu.memory_space<vmem>>, %arg4: memref<128x128xbf16, #tpu.memory_space<vmem>>, %arg5: memref<1x128xf32, #tpu.memory_space<vmem>>, %arg6: memref<1x128xf32, #tpu.memory_space<vmem>>, %arg7: memref<1x128xf32, #tpu.memory_space<vmem>>, %arg8: memref<128x128xbf16, #tpu.memory_space<vmem>>, %arg9: memref<1x128xf32, #tpu.memory_space<vmem>>, %arg10: memref<16x128xbf16, #tpu.memory_space<vmem>>) attributes {dimension_semantics = [#tpu.dimension_semantics<parallel>], iteration_bounds = array<i64: 1>, scalar_prefetch = 0 : i64, scratch_operands = 0 : i64, tpu.core_type = #tpu.core_type<tc>, window_params = [{transform_indices = @transform_0, window_bounds = array<i64: 16, 128>}, {pipeline_mode = #tpu.pipeline_mode<synchronous>, transform_indices = @transform_1, window_bounds = array<i64: 128, 128>}, {pipeline_mode = #tpu.pipeline_mode<synchronous>, transform_indices = @transform_2, window_bounds = array<i64: 1, 128>}, {pipeline_mode = #tpu.pipeline_mode<synchronous>, transform_indices = @transform_3, window_bounds = array<i64: 128, 128>}, {pipeline_mode = #tpu.pipeline_mode<synchronous>, transform_indices = @transform_4, window_bounds = array<i64: 1, 128>}, {pipeline_mode = #tpu.pipeline_mode<synchronous>, transform_indices = @transform_5, window_bounds = array<i64: 1, 128>}, {pipeline_mode = #tpu.pipeline_mode<synchronous>, transform_indices = @transform_6, window_bounds = array<i64: 1, 128>}, {pipeline_mode = #tpu.pipeline_mode<synchronous>, transform_indices = @transform_7, window_bounds = array<i64: 128, 128>}, {pipeline_mode = #tpu.pipeline_mode<synchronous>, transform_indices = @transform_8, window_bounds = array<i64: 1, 128>}, {transform_indices = @transform_9, window_bounds = array<i64: 16, 128>}]} {
    %c0 = arith.constant 0 : index
    %c0_0 = arith.constant 0 : index
    %0 = vector.load %arg1[%c0, %c0_0] : memref<16x128xf32, #tpu.memory_space<vmem>>, vector<16x128xf32>
    %1 = arith.truncf %0 : vector<16x128xf32> to vector<16x128xbf16>
    %c0_1 = arith.constant 0 : index
    %c0_2 = arith.constant 0 : index
    %2 = vector.load %arg2[%c0_1, %c0_2] : memref<128x128xbf16, #tpu.memory_space<vmem>>, vector<128x128xbf16>
    %cst = arith.constant dense<0.000000e+00> : vector<16x128xf32>
    %3 = tpu.matmul %1, %2, %cst {dimension_numbers = #tpu.dot_dimension_numbers<[1], [0], [0], [1], [0, 0, 1, 1], [], []>} : vector<16x128xbf16>, vector<128x128xbf16>, vector<16x128xf32> -> vector<16x128xf32>
    %c0_3 = arith.constant 0 : index
    %c0_4 = arith.constant 0 : index
    %4 = vector.load %arg3[%c0_3, %c0_4] : memref<1x128xf32, #tpu.memory_space<vmem>>, vector<1x128xf32>
    %5 = vector.broadcast %4 : vector<1x128xf32> to vector<16x128xf32>
    %6 = arith.addf %3, %5 : vector<16x128xf32>
    %7 = arith.truncf %6 : vector<16x128xf32> to vector<16x128xbf16>
    %c0_5 = arith.constant 0 : index
    %c0_6 = arith.constant 0 : index
    %8 = vector.load %arg4[%c0_5, %c0_6] : memref<128x128xbf16, #tpu.memory_space<vmem>>, vector<128x128xbf16>
    %cst_7 = arith.constant dense<0.000000e+00> : vector<16x128xf32>
    %9 = tpu.matmul %7, %8, %cst_7 {dimension_numbers = #tpu.dot_dimension_numbers<[1], [0], [0], [1], [0, 0, 1, 1], [], []>} : vector<16x128xbf16>, vector<128x128xbf16>, vector<16x128xf32> -> vector<16x128xf32>
    %c0_8 = arith.constant 0 : index
    %c0_9 = arith.constant 0 : index
    %10 = vector.load %arg5[%c0_8, %c0_9] : memref<1x128xf32, #tpu.memory_space<vmem>>, vector<1x128xf32>
    %11 = vector.broadcast %10 : vector<1x128xf32> to vector<16x128xf32>
    %12 = arith.addf %9, %11 : vector<16x128xf32>
    %cst_10 = arith.constant dense<0.000000e+00> : vector<16xf32>
    %13 = vector.multi_reduction <add>, %12, %cst_10 [1] : vector<16x128xf32> to vector<16xf32>
    %14 = vector.shape_cast %13 : vector<16xf32> to vector<16x1xf32>
    %cst_11 = arith.constant 3.125000e-02 : f32
    %15 = vector.broadcast %cst_11 : f32 to vector<16x1xf32>
    %16 = arith.mulf %14, %15 : vector<16x1xf32>
    %17 = vector.broadcast %16 : vector<16x1xf32> to vector<16x128xf32>
    %18 = arith.subf %12, %17 : vector<16x128xf32>
    %19 = tpu.iota {dimensions = array<i32: 1>} : vector<1x128xi32>
    %c32_i32 = arith.constant 32 : i32
    %20 = vector.broadcast %c32_i32 : i32 to vector<1x128xi32>
    %21 = arith.cmpi slt, %19, %20 : vector<1x128xi32>
    %cst_12 = arith.constant 0.000000e+00 : f32
    %22 = vector.shape_cast %21 : vector<1x128xi1> to vector<1x128xi1>
    %23 = vector.broadcast %22 : vector<1x128xi1> to vector<16x128xi1>
    %24 = vector.broadcast %cst_12 : f32 to vector<16x128xf32>
    %25 = arith.select %23, %18, %24 : vector<16x128xi1>, vector<16x128xf32>
    %26 = arith.mulf %25, %25 : vector<16x128xf32>
    %cst_13 = arith.constant dense<0.000000e+00> : vector<16xf32>
    %27 = vector.multi_reduction <add>, %26, %cst_13 [1] : vector<16x128xf32> to vector<16xf32>
    %28 = vector.shape_cast %27 : vector<16xf32> to vector<16x1xf32>
    %cst_14 = arith.constant 3.125000e-02 : f32
    %29 = vector.broadcast %cst_14 : f32 to vector<16x1xf32>
    %30 = arith.mulf %28, %29 : vector<16x1xf32>
    %cst_15 = arith.constant 9.99999974E-6 : f32
    %31 = vector.broadcast %cst_15 : f32 to vector<16x1xf32>
    %32 = arith.addf %30, %31 : vector<16x1xf32>
    %33 = math.rsqrt %32 : vector<16x1xf32>
    %34 = vector.broadcast %33 : vector<16x1xf32> to vector<16x128xf32>
    %35 = arith.mulf %25, %34 : vector<16x128xf32>
    %c0_16 = arith.constant 0 : index
    %c0_17 = arith.constant 0 : index
    %36 = vector.load %arg6[%c0_16, %c0_17] : memref<1x128xf32, #tpu.memory_space<vmem>>, vector<1x128xf32>
    %37 = vector.broadcast %36 : vector<1x128xf32> to vector<16x128xf32>
    %38 = arith.mulf %35, %37 : vector<16x128xf32>
    %c0_18 = arith.constant 0 : index
    %c0_19 = arith.constant 0 : index
    %39 = vector.load %arg7[%c0_18, %c0_19] : memref<1x128xf32, #tpu.memory_space<vmem>>, vector<1x128xf32>
    %40 = vector.broadcast %39 : vector<1x128xf32> to vector<16x128xf32>
    %41 = arith.addf %38, %40 : vector<16x128xf32>
    %cst_20 = arith.constant 0.000000e+00 : f32
    %42 = vector.broadcast %cst_20 : f32 to vector<16x128xf32>
    %43 = arith.maximumf %41, %42 : vector<16x128xf32>
    %44 = arith.addf %43, %6 : vector<16x128xf32>
    %45 = arith.truncf %44 : vector<16x128xf32> to vector<16x128xbf16>
    %c0_21 = arith.constant 0 : index
    %c0_22 = arith.constant 0 : index
    %46 = vector.load %arg8[%c0_21, %c0_22] : memref<128x128xbf16, #tpu.memory_space<vmem>>, vector<128x128xbf16>
    %cst_23 = arith.constant dense<0.000000e+00> : vector<16x128xf32>
    %47 = tpu.matmul %45, %46, %cst_23 {dimension_numbers = #tpu.dot_dimension_numbers<[1], [0], [0], [1], [0, 0, 1, 1], [], []>} : vector<16x128xbf16>, vector<128x128xbf16>, vector<16x128xf32> -> vector<16x128xf32>
    %c0_24 = arith.constant 0 : index
    %c0_25 = arith.constant 0 : index
    %48 = vector.load %arg9[%c0_24, %c0_25] : memref<1x128xf32, #tpu.memory_space<vmem>>, vector<1x128xf32>
    %49 = vector.broadcast %48 : vector<1x128xf32> to vector<16x128xf32>
    %50 = arith.addf %47, %49 : vector<16x128xf32>
    %51 = arith.truncf %50 : vector<16x128xf32> to vector<16x128xbf16>
    %c0_26 = arith.constant 0 : index
    %c0_27 = arith.constant 0 : index
    %52 = vector.load %arg10[%c0_26, %c0_27] : memref<16x128xbf16, #tpu.memory_space<vmem>>, vector<16x128xbf16>
    tpu.vector_store %arg10[%c0_26, %c0_27], %51 {strides = array<i32>} : memref<16x128xbf16, #tpu.memory_space<vmem>>, vector<16x128xbf16>,
    return
  }
  func.func @transform_0(%arg0: i32) -> (i32, i32) {
    %c0_i32 = arith.constant 0 : i32
    %c0_i32_0 = arith.constant 0 : i32
    return %arg0, %c0_i32 : i32, i32
  }
  func.func @transform_1(%arg0: i32) -> (i32, i32) {
    %c0_i32 = arith.constant 0 : i32
    %c0_i32_0 = arith.constant 0 : i32
    %c0_i32_1 = arith.constant 0 : i32
    return %c0_i32, %c0_i32_0 : i32, i32
  }
  func.func @transform_2(%arg0: i32) -> (i32, i32) {
    %c0_i32 = arith.constant 0 : i32
    %c0_i32_0 = arith.constant 0 : i32
    %c0_i32_1 = arith.constant 0 : i32
    return %c0_i32, %c0_i32_0 : i32, i32
  }
  func.func @transform_3(%arg0: i32) -> (i32, i32) {
    %c0_i32 = arith.constant 0 : i32
    %c0_i32_0 = arith.constant 0 : i32
    %c0_i32_1 = arith.constant 0 : i32
    return %c0_i32, %c0_i32_0 : i32, i32
  }
  func.func @transform_4(%arg0: i32) -> (i32, i32) {
    %c0_i32 = arith.constant 0 : i32
    %c0_i32_0 = arith.constant 0 : i32
    %c0_i32_1 = arith.constant 0 : i32
    return %c0_i32, %c0_i32_0 : i32, i32
  }
  func.func @transform_5(%arg0: i32) -> (i32, i32) {
    %c0_i32 = arith.constant 0 : i32
    %c0_i32_0 = arith.constant 0 : i32
    %c0_i32_1 = arith.constant 0 : i32
    return %c0_i32, %c0_i32_0 : i32, i32
  }
  func.func @transform_6(%arg0: i32) -> (i32, i32) {
    %c0_i32 = arith.constant 0 : i32
    %c0_i32_0 = arith.constant 0 : i32
    %c0_i32_1 = arith.constant 0 : i32
    return %c0_i32, %c0_i32_0 : i32, i32
  }
  func.func @transform_7(%arg0: i32) -> (i32, i32) {
    %c0_i32 = arith.constant 0 : i32
    %c0_i32_0 = arith.constant 0 : i32
    %c0_i32_1 = arith.constant 0 : i32
    return %c0_i32, %c0_i32_0 : i32, i32
  }
  func.func @transform_8(%arg0: i32) -> (i32, i32) {
    %c0_i32 = arith.constant 0 : i32
    %c0_i32_0 = arith.constant 0 : i32
    %c0_i32_1 = arith.constant 0 : i32
    return %c0_i32, %c0_i32_0 : i32, i32
  }
  func.func @transform_9(%arg0: i32) -> (i32, i32) {
    %c0_i32 = arith.constant 0 : i32
    %c0_i32_0 = arith.constant 0 : i32
    return %arg0, %c0_i32 : i32, i32
  }
}

module attributes {stable_mosaic.version = 11 : i64} {
  func.func @mlp_kernel(%arg0: i32, %arg1: memref<16x128xf32, #tpu.memory_space<vmem>>, %arg2: memref<128x128xbf16, #tpu.memory_space<vmem>>, %arg3: memref<1x128xf32, #tpu.memory_space<vmem>>, %arg4: memref<128x128xbf16, #tpu.memory_space<vmem>>, %arg5: memref<1x128xf32, #tpu.memory_space<vmem>>, %arg6: memref<1x128xf32, #tpu.memory_space<vmem>>, %arg7: memref<1x128xf32, #tpu.memory_space<vmem>>, %arg8: memref<128x128xbf16, #tpu.memory_space<vmem>>, %arg9: memref<1x128xf32, #tpu.memory_space<vmem>>, %arg10: memref<16x128xbf16, #tpu.memory_space<vmem>>) attributes {dimension_semantics = [#tpu.dimension_semantics<parallel>], iteration_bounds = array<i64: 1>, scalar_prefetch = 0 : i64, scratch_operands = 0 : i64, tpu.core_type = #tpu.core_type<tc>, window_params = [{transform_indices = @transform_0, window_bounds = array<i64: 16, 128>}, {pipeline_mode = #tpu.pipeline_mode<synchronous>, transform_indices = @transform_1, window_bounds = array<i64: 128, 128>}, {pipeline_mode = #tpu.pipeline_mode<synchronous>, transform_indices = @transform_2, window_bounds = array<i64: 1, 128>}, {pipeline_mode = #tpu.pipeline_mode<synchronous>, transform_indices = @transform_3, window_bounds = array<i64: 128, 128>}, {pipeline_mode = #tpu.pipeline_mode<synchronous>, transform_indices = @transform_4, window_bounds = array<i64: 1, 128>}, {pipeline_mode = #tpu.pipeline_mode<synchronous>, transform_indices = @transform_5, window_bounds = array<i64: 1, 128>}, {pipeline_mode = #tpu.pipeline_mode<synchronous>, transform_indices = @transform_6, window_bounds = array<i64: 1, 128>}, {pipeline_mode = #tpu.pipeline_mode<synchronous>, transform_indices = @transform_7, window_bounds = array<i64: 128, 128>}, {pipeline_mode = #tpu.pipeline_mode<synchronous>, transform_indices = @transform_8, window_bounds = array<i64: 1, 128>}, {transform_indices = @transform_9, window_bounds = array<i64: 16, 128>}]} {
    %c0 = arith.constant 0 : index
    %c0_0 = arith.constant 0 : index
    %0 = vector.load %arg1[%c0, %c0_0] : memref<16x128xf32, #tpu.memory_space<vmem>>, vector<16x128xf32>
    %1 = arith.truncf %0 : vector<16x128xf32> to vector<16x128xbf16>
    %c0_1 = arith.constant 0 : index
    %c0_2 = arith.constant 0 : index
    %2 = vector.load %arg2[%c0_1, %c0_2] : memref<128x128xbf16, #tpu.memory_space<vmem>>, vector<128x128xbf16>
    %cst = arith.constant dense<0.000000e+00> : vector<16x128xf32>
    %3 = tpu.matmul %1, %2, %cst {dimension_numbers = #tpu.dot_dimension_numbers<[1], [0], [0], [1], [0, 0, 1, 1], [], []>} : vector<16x128xbf16>, vector<128x128xbf16>, vector<16x128xf32> -> vector<16x128xf32>
    %c0_3 = arith.constant 0 : index
    %c0_4 = arith.constant 0 : index
    %4 = vector.load %arg3[%c0_3, %c0_4] : memref<1x128xf32, #tpu.memory_space<vmem>>, vector<1x128xf32>
    %5 = vector.broadcast %4 : vector<1x128xf32> to vector<16x128xf32>
    %6 = arith.addf %3, %5 : vector<16x128xf32>
    %7 = arith.truncf %6 : vector<16x128xf32> to vector<16x128xbf16>
    %c0_5 = arith.constant 0 : index
    %c0_6 = arith.constant 0 : index
    %8 = vector.load %arg4[%c0_5, %c0_6] : memref<128x128xbf16, #tpu.memory_space<vmem>>, vector<128x128xbf16>
    %cst_7 = arith.constant dense<0.000000e+00> : vector<16x128xf32>
    %9 = tpu.matmul %7, %8, %cst_7 {dimension_numbers = #tpu.dot_dimension_numbers<[1], [0], [0], [1], [0, 0, 1, 1], [], []>} : vector<16x128xbf16>, vector<128x128xbf16>, vector<16x128xf32> -> vector<16x128xf32>
    %c0_8 = arith.constant 0 : index
    %c0_9 = arith.constant 0 : index
    %10 = vector.load %arg5[%c0_8, %c0_9] : memref<1x128xf32, #tpu.memory_space<vmem>>, vector<1x128xf32>
    %11 = vector.broadcast %10 : vector<1x128xf32> to vector<16x128xf32>
    %12 = arith.addf %9, %11 : vector<16x128xf32>
    %cst_10 = arith.constant dense<0.000000e+00> : vector<16xf32>
    %13 = vector.multi_reduction <add>, %12, %cst_10 [1] : vector<16x128xf32> to vector<16xf32>
    %14 = vector.shape_cast %13 : vector<16xf32> to vector<16x1xf32>
    %cst_11 = arith.constant 3.125000e-02 : f32
    %15 = vector.broadcast %cst_11 : f32 to vector<16x1xf32>
    %16 = arith.mulf %14, %15 : vector<16x1xf32>
    %17 = vector.broadcast %16 : vector<16x1xf32> to vector<16x128xf32>
    %18 = arith.subf %12, %17 : vector<16x128xf32>
    %19 = tpu.iota {dimensions = array<i32: 1>} : vector<1x128xi32>
    %c32_i32 = arith.constant 32 : i32
    %20 = vector.broadcast %c32_i32 : i32 to vector<1x128xi32>
    %21 = arith.cmpi slt, %19, %20 : vector<1x128xi32>
    %cst_12 = arith.constant 0.000000e+00 : f32
    %22 = vector.shape_cast %21 : vector<1x128xi1> to vector<1x128xi1>
    %23 = vector.broadcast %22 : vector<1x128xi1> to vector<16x128xi1>
    %24 = vector.broadcast %cst_12 : f32 to vector<16x128xf32>
    %25 = arith.select %23, %18, %24 : vector<16x128xi1>, vector<16x128xf32>
    %26 = arith.mulf %25, %25 : vector<16x128xf32>
    %cst_13 = arith.constant dense<0.000000e+00> : vector<16xf32>
    %27 = vector.multi_reduction <add>, %26, %cst_13 [1] : vector<16x128xf32> to vector<16xf32>
    %28 = vector.shape_cast %27 : vector<16xf32> to vector<16x1xf32>
    %cst_14 = arith.constant 3.125000e-02 : f32
    %29 = vector.broadcast %cst_14 : f32 to vector<16x1xf32>
    %30 = arith.mulf %28, %29 : vector<16x1xf32>
    %cst_15 = arith.constant 9.99999974E-6 : f32
    %31 = vector.broadcast %cst_15 : f32 to vector<16x1xf32>
    %32 = arith.addf %30, %31 : vector<16x1xf32>
    %33 = math.rsqrt %32 : vector<16x1xf32>
    %34 = vector.broadcast %33 : vector<16x1xf32> to vector<16x128xf32>
    %35 = arith.mulf %25, %34 : vector<16x128xf32>
    %c0_16 = arith.constant 0 : index
    %c0_17 = arith.constant 0 : index
    %36 = vector.load %arg6[%c0_16, %c0_17] : memref<1x128xf32, #tpu.memory_space<vmem>>, vector<1x128xf32>
    %37 = vector.broadcast %36 : vector<1x128xf32> to vector<16x128xf32>
    %38 = arith.mulf %35, %37 : vector<16x128xf32>
    %c0_18 = arith.constant 0 : index
    %c0_19 = arith.constant 0 : index
    %39 = vector.load %arg7[%c0_18, %c0_19] : memref<1x128xf32, #tpu.memory_space<vmem>>, vector<1x128xf32>
    %40 = vector.broadcast %39 : vector<1x128xf32> to vector<16x128xf32>
    %41 = arith.addf %38, %40 : vector<16x128xf32>
    %cst_20 = arith.constant 0.000000e+00 : f32
    %42 = vector.broadcast %cst_20 : f32 to vector<16x128xf32>
    %43 = arith.maximumf %41, %42 : vector<16x128xf32>
    %44 = arith.addf %43, %6 : vector<16x128xf32>
    %45 = arith.truncf %44 : vector<16x128xf32> to vector<16x128xbf16>
    %c0_21 = arith.constant 0 : index
    %c0_22 = arith.constant 0 : index
    %46 = vector.load %arg8[%c0_21, %c0_22] : memref<128x128xbf16, #tpu.memory_space<vmem>>, vector<128x128xbf16>
    %cst_23 = arith.constant dense<0.000000e+00> : vector<16x128xf32>
    %47 = tpu.matmul %45, %46, %cst_23 {dimension_numbers = #tpu.dot_dimension_numbers<[1], [0], [0], [1], [0, 0, 1, 1], [], []>} : vector<16x128xbf16>, vector<128x128xbf16>, vector<16x128xf32> -> vector<16x128xf32>
    %c0_24 = arith.constant 0 : index
    %c0_25 = arith.constant 0 : index
    %48 = vector.load %arg9[%c0_24, %c0_25] : memref<1x128xf32, #tpu.memory_space<vmem>>, vector<1x128xf32>
    %49 = vector.broadcast %48 : vector<1x128xf32> to vector<16x128xf32>
    %50 = arith.addf %47, %49 : vector<16x128xf32>
    %51 = arith.truncf %50 : vector<16x128xf32> to vector<16x128xbf16>
    %c0_26 = arith.constant 0 : index
    %c0_27 = arith.constant 0 : index
    %52 = vector.load %arg10[%c0_26, %c0_27] : memref<16x128xbf16, #tpu.memory_space<vmem>>, vector<16x128xbf16>
    tpu.vector_store %arg10[%c0_26, %c0_27], %51 {strides = array<i32>} : memref<16x128xbf16, #tpu.memory_space<vmem>>, vector<16x128xbf16>,
    return
  }
  func.func @transform_0(%arg0: i32) -> (i32, i32) {
    %c0_i32 = arith.constant 0 : i32
    %c0_i32_0 = arith.constant 0 : i32
    return %arg0, %c0_i32 : i32, i32
  }
  func.func @transform_1(%arg0: i32) -> (i32, i32) {
    %c0_i32 = arith.constant 0 : i32
    %c0_i32_0 = arith.constant 0 : i32
    %c0_i32_1 = arith.constant 0 : i32
    return %c0_i32, %c0_i32_0 : i32, i32
  }
  func.func @transform_2(%arg0: i32) -> (i32, i32) {
    %c0_i32 = arith.constant 0 : i32
    %c0_i32_0 = arith.constant 0 : i32
    %c0_i32_1 = arith.constant 0 : i32
    return %c0_i32, %c0_i32_0 : i32, i32
  }
  func.func @transform_3(%arg0: i32) -> (i32, i32) {
    %c0_i32 = arith.constant 0 : i32
    %c0_i32_0 = arith.constant 0 : i32
    %c0_i32_1 = arith.constant 0 : i32
    return %c0_i32, %c0_i32_0 : i32, i32
  }
  func.func @transform_4(%arg0: i32) -> (i32, i32) {
    %c0_i32 = arith.constant 0 : i32
    %c0_i32_0 = arith.constant 0 : i32
    %c0_i32_1 = arith.constant 0 : i32
    return %c0_i32, %c0_i32_0 : i32, i32
  }
  func.func @transform_5(%arg0: i32) -> (i32, i32) {
    %c0_i32 = arith.constant 0 : i32
    %c0_i32_0 = arith.constant 0 : i32
    %c0_i32_1 = arith.constant 0 : i32
    return %c0_i32, %c0_i32_0 : i32, i32
  }
  func.func @transform_6(%arg0: i32) -> (i32, i32) {
    %c0_i32 = arith.constant 0 : i32
    %c0_i32_0 = arith.constant 0 : i32
    %c0_i32_1 = arith.constant 0 : i32
    return %c0_i32, %c0_i32_0 : i32, i32
  }
  func.func @transform_7(%arg0: i32) -> (i32, i32) {
    %c0_i32 = arith.constant 0 : i32
    %c0_i32_0 = arith.constant 0 : i32
    %c0_i32_1 = arith.constant 0 : i32
    return %c0_i32, %c0_i32_0 : i32, i32
  }
  func.func @transform_8(%arg0: i32) -> (i32, i32) {
    %c0_i32 = arith.constant 0 : i32
    %c0_i32_0 = arith.constant 0 : i32
    %c0_i32_1 = arith.constant 0 : i32
    return %c0_i32, %c0_i32_0 : i32, i32
  }
  func.func @transform_9(%arg0: i32) -> (i32, i32) {
    %c0_i32 = arith.constant 0 : i32
    %c0_i32_0 = arith.constant 0 : i32
    return %arg0, %c0_i32 : i32, i32
  }
}

</mosaic_0001>

<bundles_post_ra>
// kernel: tpu_custom_call.1
= control target key start
LH: loop header
LB: loop body
LE: loop exit
PB: predicated region body
PF: predicated region fallthrough
CT: control target
= control target key end

     0   :  { %14 = vsyncpa [#allocation3], 0  ;;  %s985_s0 = inlined_call_operand.hbm [shape: f32[16,128], index: 0, kind: input, shape index: {}]   ;;  %s986_s1 = inlined_call_operand.hbm [shape: bf16[128,128], index: 1, kind: input, shape index: {}]   ;;  %s987_s2 = inlined_call_operand.vmem [shape: f32[1,128], index: 2, kind: input, shape index: {}]   ;;  %s988_s3 = inlined_call_operand.hbm [shape: bf16[128,128], index: 3, kind: input, shape index: {}]   ;;  %s989_s4 = inlined_call_operand.vmem [shape: f32[1,128], index: 4, kind: input, shape index: {}]   ;;  %s990_s5 = inlined_call_operand.vmem [shape: f32[1,128], index: 5, kind: input, shape index: {}]   ;;  %s991_s6 = inlined_call_operand.vmem [shape: f32[1,128], index: 6, kind: input, shape index: {}]   ;;  %s992_s7 = inlined_call_operand.hbm [shape: bf16[128,128], index: 7, kind: input, shape index: {}]   ;;  %s993_s8 = inlined_call_operand.vmem [shape: f32[1,128], index: 8, kind: input, shape index: {}]   ;;  %s994_s9 = inlined_call_operand.hbm [shape: bf16[16,128], index: 9, kind: output, shape index: {}]  }
   0x1   :  { %15 = vsyncpa [#allocation6], 0 }
   0x2   :  { %16 = vsyncpa [#allocation9], 0 }
   0x3   :  { %17 = vsyncpa [#allocation4], 0  ;;  %s792_s30 = smov [#allocation5]   ;;  %s674_s13 = scalar_lea.hbm %s986_s1, 1024 }
   0x4   :  { %s35_s10 = sshll.u32 %s792_s30, 4  ;;  %p675_p0 = scmp.ne.s32.totalorder %s986_s1, %s674_s13  ;;  %s36_s10 = int_to_ptr.vmem [resolvable:$true] %s35_s10 }
   0x5   :  { %p678_p1 = scmp.lt.u32.totalorder %s674_s13, %s986_s1 }
   0x7   :  { %p680_p2 = pnand %p678_p1, %p675_p0 }
   0x9   :  { %683 = shalt.err (!%p680_p2)
}
   0xa   :  { %s684_s18 = scalar_lea.vmem %s36_s10, 1024  ;;  %p689_p4 = scmp.lt.s32.totalorder %s36_s10, %s36_s10 }
   0xb   :  { %p685_p3 = scmp.ne.s32.totalorder %s36_s10, %s684_s18  ;;  %p690_p5 = scmp.lt.s32.totalorder %s684_s18, %s684_s18 }
   0xd   :  { %p691_p6 = por %p690_p5, %p689_p4 }
   0xf   :  { %p692_p7 = pnand %p691_p6, %p685_p3 }
  0x11   :  { %695 = shalt.err (!%p692_p7)
}
  0x12   :  { %s793_s19 = smov 64   ;;  %s794_s20 = smov 4  }
  0x13   :  { %41 = dma.hbm_to_vmem [thread:$0]  %s986_s1, 1024, %s36_s10, [#allocation6], %s793_s19, %s793_s19, %s794_s20  }
  0x14   :  { %s795_s23 = smov [#allocation2]   ;;  %s696_s27 = scalar_lea.hbm %s985_s0, 256 }
  0x15   :  { %s23_s24 = sshll.u32 %s795_s23, 4  ;;  %p697_p8 = scmp.ne.s32.totalorder %s985_s0, %s696_s27  ;;  %s24_s24 = int_to_ptr.vmem [resolvable:$true] %s23_s24 }
  0x16   :  { %p700_p9 = scmp.lt.u32.totalorder %s696_s27, %s985_s0 }
  0x18   :  { %p702_p10 = pnand %p700_p9, %p697_p8 }
  0x1a   :  { %705 = shalt.err (!%p702_p10)
}
  0x1b   :  { %s706_s12 = scalar_lea.vmem %s24_s24, 256  ;;  %p711_p12 = scmp.lt.s32.totalorder %s24_s24, %s24_s24 }
  0x1c   :  { %p707_p11 = scmp.ne.s32.totalorder %s24_s24, %s706_s12  ;;  %p712_p13 = scmp.lt.s32.totalorder %s706_s12, %s706_s12 }
  0x1e   :  { %p713_p0 = por %p712_p13, %p711_p12 }
  0x20   :  { %p714_p1 = pnand %p713_p0, %p707_p11 }
  0x22   :  { %717 = shalt.err (!%p714_p1)
}
  0x23   :  { %s796_s1 = smov 128   ;;  %s797_s10 = smov 8  }
  0x24   :  { %29 = dma.hbm_to_vmem [thread:$0]  %s985_s0, 256, %s24_s24, [#allocation3], %s796_s1, %s796_s1, %s797_s10  }
  0x25   :  { %s798_s15 = smov [#allocation7]   ;;  %s799_s17 = smov [#allocation8]  }
  0x26   :  { %s49_s16 = sshll.u32 %s798_s15, 4  ;;  %s67_s18 = sshll.u32 %s799_s17, 4  ;;  %s50_s16 = int_to_ptr.vmem [resolvable:$true] %s49_s16  ;;  %s880_s18 = int_to_ptr.vmem [resolvable:$true] %s67_s18 }
  0x27   :  { %s718_s23 = scalar_lea.hbm %s988_s3, 1024 }
  0x28   :  { %p719_p2 = scmp.ne.s32.totalorder %s988_s3, %s718_s23  ;;  %p722_p3 = scmp.lt.u32.totalorder %s718_s23, %s988_s3 }
  0x2a   :  { %p724_p4 = pnand %p722_p3, %p719_p2 }
  0x2c   :  { %727 = shalt.err (!%p724_p4)
}
  0x2d   :  { %s728_s0 = scalar_lea.vmem %s50_s16, 1024  ;;  %p733_p6 = scmp.lt.s32.totalorder %s50_s16, %s50_s16 }
  0x2e   :  { %p729_p5 = scmp.ne.s32.totalorder %s50_s16, %s728_s0  ;;  %p734_p7 = scmp.lt.s32.totalorder %s728_s0, %s728_s0 }
  0x30   :  { %p735_p8 = por %p734_p7, %p733_p6 }
  0x32   :  { %p736_p9 = pnand %p735_p8, %p729_p5 }
  0x34   :  { %739 = shalt.err (!%p736_p9)
}
  0x35   :  { %55 = dma.hbm_to_vmem [thread:$0]  %s988_s3, 1024, %s50_s16, [#allocation6], %s793_s19, %s793_s19, %s794_s20  }
  0x36   :  { %s740_s12 = scalar_lea.hbm %s992_s7, 1024 }
  0x37   :  { %p741_p10 = scmp.ne.s32.totalorder %s992_s7, %s740_s12  ;;  %p744_p11 = scmp.lt.u32.totalorder %s740_s12, %s992_s7 }
  0x39   :  { %p746_p12 = pnand %p744_p11, %p741_p10 }
  0x3b   :  { %749 = shalt.err (!%p746_p12)
}
  0x3c   :  { %s750_s15 = scalar_lea.vmem %s880_s18, 1024  ;;  %p755_p0 = scmp.lt.s32.totalorder %s880_s18, %s880_s18 }
  0x3d   :  { %p751_p13 = scmp.ne.s32.totalorder %s880_s18, %s750_s15  ;;  %p756_p1 = scmp.lt.s32.totalorder %s750_s15, %s750_s15 }
  0x3f   :  { %p757_p2 = por %p756_p1, %p755_p0 }
  0x41   :  { %p758_p3 = pnand %p757_p2, %p751_p13 }
  0x43   :  { %761 = shalt.err (!%p758_p3)
}
  0x44   :  { %73 = dma.hbm_to_vmem [thread:$0]  %s992_s7, 1024, %s880_s18, [#allocation9], %s793_s19, %s793_s19, %s794_s20  }
  0x45   :  { %784 = dma.done.wait [#allocation3], 256  }
  0x46   :  { %785 = vsyncadd [#allocation3], 4294967040 }
  0x47   :  { %786 = dma.done.wait [#allocation6], 2048  }
  0x48   :  { %787 = vsyncadd [#allocation6], 4294965248 }
  0x49   :  { %788 = dma.done.wait [#allocation9], 1024  }
  0x4a   :  { %789 = vsyncadd [#allocation9], 4294966272  ;;  %v800_v0 = vmov 0.0   ;;  %vm801_vm0 = vmmov 0   ;;  %v646_v1 = vld [vmem:[#allocation5] sm:$0xff]   ;;  %v647_v2 = vld [vmem:[#allocation5 + $0x8] sm:$0xff]   ;;  %v325_v35 = vlaneseq }
  0x4b   :  { %575 = vmatprep.subr.bf16.mxu0 %v800_v0  ;;  %591 = vmatprep.mubr.msk.bf16.mxu0 %vm801_vm0, %v800_v0  ;;  %v648_v3 = vld [vmem:[#allocation5 + $0x10] sm:$0xff]   ;;  %v654_v4 = vld [vmem:[#allocation7] sm:$0xff]   ;;  %v649_v5 = vld [vmem:[#allocation5 + $0x18] sm:$0xff]  }
  0x4c   :  { %595 = vmatprep.subr.bf16.mxu1 %v800_v0  ;;  %611 = vmatprep.mubr.msk.bf16.mxu1 %vm801_vm0, %v800_v0  ;;  %v655_v6 = vld [vmem:[#allocation7 + $0x8] sm:$0xff]   ;;  %v650_v7 = vld [vmem:[#allocation5 + $0x20] sm:$0xff]   ;;  %v656_v8 = vld [vmem:[#allocation7 + $0x10] sm:$0xff]   ;;  %v326_v36 = vand.u32 127, %v325_v35 }
  0x4d   :  { %576 = vmatpush3.bf16.msra.mxu0 %v646_v1  ;;  %596 = vmatpush3.bf16.msra.mxu1 %v654_v4  ;;  %v651_v9 = vld [vmem:[#allocation5 + $0x28] sm:$0xff]   ;;  %v657_v10 = vld [vmem:[#allocation7 + $0x18] sm:$0xff]   ;;  %v652_v11 = vld [vmem:[#allocation5 + $0x30] sm:$0xff]  }
  0x4e   :  { %577 = vmatprep.subr.bf16.mxu0 %v800_v0  ;;  %597 = vmatprep.subr.bf16.mxu1 %v800_v0  ;;  %v658_v12 = vld [vmem:[#allocation7 + $0x20] sm:$0xff]   ;;  %v653_v13 = vld [vmem:[#allocation5 + $0x38] sm:$0xff]   ;;  %v89_v14 = vld [vmem:[#allocation2] sm:$0xff]  ;;  %vm327_vm1 = vcmp.lt.s32.totalorder %v326_v36, 32 }
  0x4f   :  { %v90_v15 = vld [vmem:[#allocation2 + $0x8] sm:$0xff]  ;;  %v659_v16 = vld [vmem:[#allocation7 + $0x28] sm:$0xff]   ;;  %v660_v18 = vld [vmem:[#allocation7 + $0x30] sm:$0xff]  }
  0x50   :  { %v91_v17 = vpack.c.bf16 %v90_v15, %v89_v14  ;;  %v661_v19 = vld [vmem:[#allocation7 + $0x38] sm:$0xff]   ;;  %v510_v20 = vld [vmem:[%s987_s2] ss:$0 sm:$0xff]  ;;  %v662_v47 = vld [vmem:[#allocation8] sm:$0xff]  }
  0x51   :  { %578 = vmatpush3.bf16.msra.mxu0 %v647_v2  ;;  %598 = vmatpush3.bf16.msra.mxu1 %v655_v6  ;;  %v519_v28 = vld [vmem:[%s989_s4] ss:$0 sm:$0xff]  ;;  %v663_v48 = vld [vmem:[#allocation8 + $0x8] sm:$0xff]   ;;  %v665_v50 = vld [vmem:[#allocation8 + $0x18] sm:$0xff]  }
  0x52   :  { %579 = vmatprep.subr.bf16.mxu0 %v800_v0  ;;  %599 = vmatprep.subr.bf16.mxu1 %v800_v0  ;;  %v664_v49 = vld [vmem:[#allocation8 + $0x10] sm:$0xff]   ;;  %v666_v51 = vld [vmem:[#allocation8 + $0x20] sm:$0xff]   ;;  %v667_v52 = vld [vmem:[#allocation8 + $0x28] sm:$0xff]  }
  0x53   :  { %v668_v53 = vld [vmem:[#allocation8 + $0x30] sm:$0xff]   ;;  %v669_v54 = vld [vmem:[#allocation8 + $0x38] sm:$0xff]  }
  0x54   :  { %v528_v62 = vld [vmem:[%s990_s5] ss:$0 sm:$0xff] }
  0x55   :  { %580 = vmatpush3.bf16.msra.mxu0 %v648_v3  ;;  %600 = vmatpush3.bf16.msra.mxu1 %v656_v8  ;;  %v529_v1 = vld [vmem:[%s991_s6] ss:$0 sm:$0xff]  ;;  %s802_s6 = smov [#allocation10]  }
  0x56   :  { %581 = vmatprep.subr.bf16.mxu0 %v800_v0  ;;  %601 = vmatprep.subr.bf16.mxu1 %v800_v0  ;;  %s496_s26 = sshll.u32 %s802_s6, 4  ;;  %s497_s26 = int_to_ptr.vmem [resolvable:$true] %s496_s26 }
  0x57   :  { %s762_s27 = scalar_lea.vmem %s497_s26, 128  ;;  %p767_p5 = scmp.lt.s32.totalorder %s497_s26, %s497_s26 }
  0x58   :  { %p763_p4 = scmp.ne.s32.totalorder %s497_s26, %s762_s27  ;;  %p768_p6 = scmp.lt.s32.totalorder %s762_s27, %s762_s27 }
  0x59   :  { %582 = vmatpush3.bf16.msra.mxu0 %v649_v5  ;;  %602 = vmatpush3.bf16.msra.mxu1 %v657_v10 }
  0x5a   :  { %583 = vmatprep.subr.bf16.mxu0 %v800_v0  ;;  %603 = vmatprep.subr.bf16.mxu1 %v800_v0  ;;  %p769_p7 = por %p768_p6, %p767_p5 }
  0x5c   :  { %p770_p8 = pnand %p769_p7, %p763_p4 }
  0x5d   :  { %584 = vmatpush3.bf16.msra.mxu0 %v650_v7  ;;  %604 = vmatpush3.bf16.msra.mxu1 %v658_v12  ;;  %v530_v12 = vld [vmem:[%s993_s8] ss:$0 sm:$0xff] }
  0x5e   :  { %585 = vmatprep.subr.bf16.mxu0 %v800_v0  ;;  %605 = vmatprep.subr.bf16.mxu1 %v800_v0 }
  0x61   :  { %586 = vmatpush3.bf16.msra.mxu0 %v651_v9  ;;  %606 = vmatpush3.bf16.msra.mxu1 %v659_v16 }
  0x62   :  { %587 = vmatprep.subr.bf16.mxu0 %v800_v0  ;;  %607 = vmatprep.subr.bf16.mxu1 %v800_v0 }
  0x65   :  { %588 = vmatpush3.bf16.msra.mxu0 %v652_v11  ;;  %608 = vmatpush3.bf16.msra.mxu1 %v660_v18 }
  0x66   :  { %589 = vmatprep.subr.bf16.mxu0 %v800_v0  ;;  %609 = vmatprep.subr.bf16.mxu1 %v800_v0 }
  0x69   :  { %590 = vmatpush3.bf16.msra.mxu0 %v653_v13  ;;  %610 = vmatpush3.bf16.msra.mxu1 %v661_v19 }
  0x6a   :  { %615 = vmatprep.subr.bf16.mxu0 %v800_v0 }
  0x6c   :  { %592 = vmatmul.mubr.bf16.vlgmr.msra.gmra.mrb[0].mxu0 %v91_v17 }
  0x6d   :  { %631 = vmatprep.mubr.msk.bf16.mxu0 %vm801_vm0, %v800_v0  ;;  %616 = vmatpush3.bf16.msra.mxu0 %v662_v47 }
  0x6e   :  { %617 = vmatprep.subr.bf16.mxu0 %v800_v0 }
  0x71   :  { %618 = vmatpush3.bf16.msra.mxu0 %v663_v48 }
  0x72   :  { %619 = vmatprep.subr.bf16.mxu0 %v800_v0 }
  0x75   :  { %620 = vmatpush3.bf16.msra.mxu0 %v664_v49 }
  0x76   :  { %621 = vmatprep.subr.bf16.mxu0 %v800_v0 }
  0x79   :  { %622 = vmatpush3.bf16.msra.mxu0 %v665_v50 }
  0x7a   :  { %623 = vmatprep.subr.bf16.mxu0 %v800_v0 }
  0x7d   :  { %624 = vmatpush3.bf16.msra.mxu0 %v666_v51 }
  0x7e   :  { %625 = vmatprep.subr.bf16.mxu0 %v800_v0 }
  0x81   :  { %626 = vmatpush3.bf16.msra.mxu0 %v667_v52 }
  0x82   :  { %627 = vmatprep.subr.bf16.mxu0 %v800_v0 }
  0x85   :  { %628 = vmatpush3.bf16.msra.mxu0 %v668_v53 }
  0x86   :  { %629 = vmatprep.subr.bf16.mxu0 %v800_v0 }
  0x89   :  { %630 = vmatpush3.bf16.msra.mxu0 %v669_v54 }
 0x13f   :  { %v197_v21 = vpop.f32.mrb[0].mxu0 }
 0x140   :  { %v593_v22 = vpop.f32.mrb[1].mxu0  ;;  %v943_v24 = vadd.f32 %v510_v20, %v197_v21 }
 0x141   :  { %v200_v23 = vpop.f32.mrb[2].mxu0 }
 0x142   :  { %v945_v25 = vadd.f32 %v510_v20, %v200_v23  ;;  %v594_v26 = vpop.f32.mrb[3].mxu0 }
 0x144   :  { %v204_v27 = vpack.c.bf16 %v945_v25, %v943_v24 }
 0x146   :  { %612 = vmatmul.mubr.bf16.vlgmr.msra.gmra.mrb[0].mxu1 %v204_v27 }
 0x219   :  { %v310_v29 = vpop.f32.mrb[0].mxu1 }
 0x21a   :  { %v311_v30 = vadd.f32 %v519_v28, %v310_v29  ;;  %v613_v31 = vpop.f32.mrb[1].mxu1 }
 0x21b   :  { %v313_v32 = vpop.f32.mrb[2].mxu1 }
 0x21c   :  { %317 = vadd.xlane.f32.xlu0 %v311_v30  ;;  %v614_v33 = vpop.f32.mrb[3].mxu1  ;;  %v314_v34 = vadd.f32 %v519_v28, %v313_v32 }
 0x220   :  { %319 = vadd.xlane.f32.xlu0 %v314_v34 }
 0x2a9   :  { %v318_v37 = vpop.xlane.xlu0 %317 }
 0x2aa   :  { %v321_v38 = vmul.f32 0.03125, %v318_v37 }
 0x2ac   :  { %v323_v39 = vsub.f32 %v311_v30, %v321_v38 }
 0x2ad   :  { %v320_v40 = vpop.xlane.xlu0 %319 }
 0x2ae   :  { %v322_v41 = vmul.f32 0.03125, %v320_v40  ;;  %v330_v42 = vsel %vm327_vm1, %v323_v39, 0.0 }
 0x2af   :  { %v332_v43 = vmul.f32 %v330_v42, %v330_v42 }
 0x2b0   :  { %v324_v44 = vsub.f32 %v314_v34, %v322_v41 }
 0x2b1   :  { %334 = vadd.xlane.f32.xlu1 %v332_v43 }
 0x2b2   :  { %v331_v45 = vsel %vm327_vm1, %v324_v44, 0.0 }
 0x2b3   :  { %v333_v46 = vmul.f32 %v331_v45, %v331_v45 }
 0x2b5   :  { %336 = vadd.xlane.f32.xlu1 %v333_v46 }
 0x33e   :  { %v335_v55 = vpop.xlane.xlu1 %334 }
 0x33f   :  { %v338_v56 = vmul.f32 0.03125, %v335_v55 }
 0x341   :  { %v340_v57 = vadd.f32 1e-05, %v338_v56 }
 0x342   :  { %v337_v58 = vpop.xlane.xlu1 %336 }
 0x343   :  { %670 = vrsqrt.f32 %v340_v57  ;;  %v339_v59 = vmul.f32 0.03125, %v337_v58 }
 0x345   :  { %v341_v60 = vadd.f32 1e-05, %v339_v59 }
 0x347   :  { %672 = vrsqrt.f32 %v341_v60 }
 0x34d   :  { %v671_v61 = vpop.eup %670 }
 0x34e   :  { %v344_v63 = vmul.f32 %v671_v61, %v330_v42 }
 0x350   :  { %v353_v0 = vmul.f32 %v528_v62, %v344_v63 }
 0x351   :  { %v673_v2 = vpop.eup %672 }
 0x352   :  { %v345_v3 = vmul.f32 %v673_v2, %v331_v45  ;;  %v362_v4 = vadd.f32 %v529_v1, %v353_v0 }
 0x354   :  { %v354_v5 = vmul.f32 %v528_v62, %v345_v3  ;;  %v364_v7 = vmax.f32 %v362_v4, 0.0 }
 0x356   :  { %v363_v6 = vadd.f32 %v529_v1, %v354_v5  ;;  %v366_v9 = vadd.f32 %v364_v7, %v943_v24 }
 0x358   :  { %v365_v8 = vmax.f32 %v363_v6, 0.0 }
 0x35a   :  { %v367_v10 = vadd.f32 %v365_v8, %v945_v25 }
 0x35c   :  { %v368_v11 = vpack.c.bf16 %v367_v10, %v366_v9 }
 0x35e   :  { %632 = vmatmul.mubr.bf16.vlgmr.msra.gmra.mrb[4].mxu0 %v368_v11 }
 0x431   :  { %v474_v13 = vpop.f32.mrb[4].mxu0 }
 0x432   :  { %v633_v14 = vpop.f32.mrb[5].mxu0  ;;  %v475_v16 = vadd.f32 %v530_v12, %v474_v13 }
 0x433   :  { %v477_v15 = vpop.f32.mrb[6].mxu0 }
 0x434   :  { %v478_v17 = vadd.f32 %v530_v12, %v477_v15  ;;  %v634_v18 = vpop.f32.mrb[7].mxu0 }
 0x436   :  { %v546_v19 = vpack.c.bf16 %v478_v17, %v475_v16 }
 0x438   :  { %547 = vst [vmem:[#allocation10] sm:$0xff] %v546_v19  }
 0x439   :  { %773 = shalt.err (!%p770_p8)
}
 0x43a   :  { %s774_s0 = scalar_lea.hbm %s994_s9, 128 }
 0x43b   :  { %p775_p9 = scmp.ne.s32.totalorder %s994_s9, %s774_s0  ;;  %p778_p10 = scmp.lt.u32.totalorder %s774_s0, %s994_s9 }
 0x43d   :  { %p780_p11 = pnand %p778_p10, %p775_p9 }
 0x43f   :  { %783 = shalt.err (!%p780_p11)
}
 0x440   :  { %502 = dma.vmem_to_hbm [thread:$0]  %s497_s26, 128, %s994_s9, [#allocation4], %s793_s19, %s793_s19, %s794_s20  }
 0x441   :  { %790 = dma.done.wait [#allocation4], 128  }
 0x442   :  { %791 = vsyncadd [#allocation4], 4294967168 }
 0x443   :  { %506 = vsyncpa [#allocation3], 1 }
 0x444   :  { %507 = vsyncpa [#allocation6], 1 }
 0x445   :  { %508 = vsyncpa [#allocation9], 1 }
 0x446   :  { %509 = vsyncpa [#allocation4], 1 }

// kernel: tpu_custom_call.1
= control target key start
LH: loop header
LB: loop body
LE: loop exit
PB: predicated region body
PF: predicated region fallthrough
CT: control target
= control target key end

     0   :  { %14 = vsyncpa [#allocation3], 0  ;;  %s985_s0 = inlined_call_operand.hbm [shape: f32[16,128], index: 0, kind: input, shape index: {}]   ;;  %s986_s1 = inlined_call_operand.hbm [shape: bf16[128,128], index: 1, kind: input, shape index: {}]   ;;  %s987_s2 = inlined_call_operand.vmem [shape: f32[1,128], index: 2, kind: input, shape index: {}]   ;;  %s988_s3 = inlined_call_operand.hbm [shape: bf16[128,128], index: 3, kind: input, shape index: {}]   ;;  %s989_s4 = inlined_call_operand.vmem [shape: f32[1,128], index: 4, kind: input, shape index: {}]   ;;  %s990_s5 = inlined_call_operand.vmem [shape: f32[1,128], index: 5, kind: input, shape index: {}]   ;;  %s991_s6 = inlined_call_operand.vmem [shape: f32[1,128], index: 6, kind: input, shape index: {}]   ;;  %s992_s7 = inlined_call_operand.hbm [shape: bf16[128,128], index: 7, kind: input, shape index: {}]   ;;  %s993_s8 = inlined_call_operand.vmem [shape: f32[1,128], index: 8, kind: input, shape index: {}]   ;;  %s994_s9 = inlined_call_operand.hbm [shape: bf16[16,128], index: 9, kind: output, shape index: {}]  }
   0x1   :  { %15 = vsyncpa [#allocation6], 0 }
   0x2   :  { %16 = vsyncpa [#allocation9], 0 }
   0x3   :  { %17 = vsyncpa [#allocation4], 0  ;;  %s792_s30 = smov [#allocation5]   ;;  %s674_s13 = scalar_lea.hbm %s986_s1, 1024 }
   0x4   :  { %s35_s10 = sshll.u32 %s792_s30, 4  ;;  %p675_p0 = scmp.ne.s32.totalorder %s986_s1, %s674_s13  ;;  %s36_s10 = int_to_ptr.vmem [resolvable:$true] %s35_s10 }
   0x5   :  { %p678_p1 = scmp.lt.u32.totalorder %s674_s13, %s986_s1 }
   0x7   :  { %p680_p2 = pnand %p678_p1, %p675_p0 }
   0x9   :  { %683 = shalt.err (!%p680_p2)
}
   0xa   :  { %s684_s18 = scalar_lea.vmem %s36_s10, 1024  ;;  %p689_p4 = scmp.lt.s32.totalorder %s36_s10, %s36_s10 }
   0xb   :  { %p685_p3 = scmp.ne.s32.totalorder %s36_s10, %s684_s18  ;;  %p690_p5 = scmp.lt.s32.totalorder %s684_s18, %s684_s18 }
   0xd   :  { %p691_p6 = por %p690_p5, %p689_p4 }
   0xf   :  { %p692_p7 = pnand %p691_p6, %p685_p3 }
  0x11   :  { %695 = shalt.err (!%p692_p7)
}
  0x12   :  { %s793_s19 = smov 64   ;;  %s794_s20 = smov 4  }
  0x13   :  { %41 = dma.hbm_to_vmem [thread:$0]  %s986_s1, 1024, %s36_s10, [#allocation6], %s793_s19, %s793_s19, %s794_s20  }
  0x14   :  { %s795_s23 = smov [#allocation2]   ;;  %s696_s27 = scalar_lea.hbm %s985_s0, 256 }
  0x15   :  { %s23_s24 = sshll.u32 %s795_s23, 4  ;;  %p697_p8 = scmp.ne.s32.totalorder %s985_s0, %s696_s27  ;;  %s24_s24 = int_to_ptr.vmem [resolvable:$true] %s23_s24 }
  0x16   :  { %p700_p9 = scmp.lt.u32.totalorder %s696_s27, %s985_s0 }
  0x18   :  { %p702_p10 = pnand %p700_p9, %p697_p8 }
  0x1a   :  { %705 = shalt.err (!%p702_p10)
}
  0x1b   :  { %s706_s12 = scalar_lea.vmem %s24_s24, 256  ;;  %p711_p12 = scmp.lt.s32.totalorder %s24_s24, %s24_s24 }
  0x1c   :  { %p707_p11 = scmp.ne.s32.totalorder %s24_s24, %s706_s12  ;;  %p712_p13 = scmp.lt.s32.totalorder %s706_s12, %s706_s12 }
  0x1e   :  { %p713_p0 = por %p712_p13, %p711_p12 }
  0x20   :  { %p714_p1 = pnand %p713_p0, %p707_p11 }
  0x22   :  { %717 = shalt.err (!%p714_p1)
}
  0x23   :  { %s796_s1 = smov 128   ;;  %s797_s10 = smov 8  }
  0x24   :  { %29 = dma.hbm_to_vmem [thread:$0]  %s985_s0, 256, %s24_s24, [#allocation3], %s796_s1, %s796_s1, %s797_s10  }
  0x25   :  { %s798_s15 = smov [#allocation7]   ;;  %s799_s17 = smov [#allocation8]  }
  0x26   :  { %s49_s16 = sshll.u32 %s798_s15, 4  ;;  %s67_s18 = sshll.u32 %s799_s17, 4  ;;  %s50_s16 = int_to_ptr.vmem [resolvable:$true] %s49_s16  ;;  %s880_s18 = int_to_ptr.vmem [resolvable:$true] %s67_s18 }
  0x27   :  { %s718_s23 = scalar_lea.hbm %s988_s3, 1024 }
  0x28   :  { %p719_p2 = scmp.ne.s32.totalorder %s988_s3, %s718_s23  ;;  %p722_p3 = scmp.lt.u32.totalorder %s718_s23, %s988_s3 }
  0x2a   :  { %p724_p4 = pnand %p722_p3, %p719_p2 }
  0x2c   :  { %727 = shalt.err (!%p724_p4)
}
  0x2d   :  { %s728_s0 = scalar_lea.vmem %s50_s16, 1024  ;;  %p733_p6 = scmp.lt.s32.totalorder %s50_s16, %s50_s16 }
  0x2e   :  { %p729_p5 = scmp.ne.s32.totalorder %s50_s16, %s728_s0  ;;  %p734_p7 = scmp.lt.s32.totalorder %s728_s0, %s728_s0 }
  0x30   :  { %p735_p8 = por %p734_p7, %p733_p6 }
  0x32   :  { %p736_p9 = pnand %p735_p8, %p729_p5 }
  0x34   :  { %739 = shalt.err (!%p736_p9)
}
  0x35   :  { %55 = dma.hbm_to_vmem [thread:$0]  %s988_s3, 1024, %s50_s16, [#allocation6], %s793_s19, %s793_s19, %s794_s20  }
  0x36   :  { %s740_s12 = scalar_lea.hbm %s992_s7, 1024 }
  0x37   :  { %p741_p10 = scmp.ne.s32.totalorder %s992_s7, %s740_s12  ;;  %p744_p11 = scmp.lt.u32.totalorder %s740_s12, %s992_s7 }
  0x39   :  { %p746_p12 = pnand %p744_p11, %p741_p10 }
  0x3b   :  { %749 = shalt.err (!%p746_p12)
}
  0x3c   :  { %s750_s15 = scalar_lea.vmem %s880_s18, 1024  ;;  %p755_p0 = scmp.lt.s32.totalorder %s880_s18, %s880_s18 }
  0x3d   :  { %p751_p13 = scmp.ne.s32.totalorder %s880_s18, %s750_s15  ;;  %p756_p1 = scmp.lt.s32.totalorder %s750_s15, %s750_s15 }
  0x3f   :  { %p757_p2 = por %p756_p1, %p755_p0 }
  0x41   :  { %p758_p3 = pnand %p757_p2, %p751_p13 }
  0x43   :  { %761 = shalt.err (!%p758_p3)
}
  0x44   :  { %73 = dma.hbm_to_vmem [thread:$0]  %s992_s7, 1024, %s880_s18, [#allocation9], %s793_s19, %s793_s19, %s794_s20  }
  0x45   :  { %784 = dma.done.wait [#allocation3], 256  }
  0x46   :  { %785 = vsyncadd [#allocation3], 4294967040 }
  0x47   :  { %786 = dma.done.wait [#allocation6], 2048  }
  0x48   :  { %787 = vsyncadd [#allocation6], 4294965248 }
  0x49   :  { %788 = dma.done.wait [#allocation9], 1024  }
  0x4a   :  { %789 = vsyncadd [#allocation9], 4294966272  ;;  %v800_v0 = vmov 0.0   ;;  %vm801_vm0 = vmmov 0   ;;  %v646_v1 = vld [vmem:[#allocation5] sm:$0xff]   ;;  %v647_v2 = vld [vmem:[#allocation5 + $0x8] sm:$0xff]   ;;  %v325_v35 = vlaneseq }
  0x4b   :  { %575 = vmatprep.subr.bf16.mxu0 %v800_v0  ;;  %591 = vmatprep.mubr.msk.bf16.mxu0 %vm801_vm0, %v800_v0  ;;  %v648_v3 = vld [vmem:[#allocation5 + $0x10] sm:$0xff]   ;;  %v654_v4 = vld [vmem:[#allocation7] sm:$0xff]   ;;  %v649_v5 = vld [vmem:[#allocation5 + $0x18] sm:$0xff]  }
  0x4c   :  { %595 = vmatprep.subr.bf16.mxu1 %v800_v0  ;;  %611 = vmatprep.mubr.msk.bf16.mxu1 %vm801_vm0, %v800_v0  ;;  %v655_v6 = vld [vmem:[#allocation7 + $0x8] sm:$0xff]   ;;  %v650_v7 = vld [vmem:[#allocation5 + $0x20] sm:$0xff]   ;;  %v656_v8 = vld [vmem:[#allocation7 + $0x10] sm:$0xff]   ;;  %v326_v36 = vand.u32 127, %v325_v35 }
  0x4d   :  { %576 = vmatpush3.bf16.msra.mxu0 %v646_v1  ;;  %596 = vmatpush3.bf16.msra.mxu1 %v654_v4  ;;  %v651_v9 = vld [vmem:[#allocation5 + $0x28] sm:$0xff]   ;;  %v657_v10 = vld [vmem:[#allocation7 + $0x18] sm:$0xff]   ;;  %v652_v11 = vld [vmem:[#allocation5 + $0x30] sm:$0xff]  }
  0x4e   :  { %577 = vmatprep.subr.bf16.mxu0 %v800_v0  ;;  %597 = vmatprep.subr.bf16.mxu1 %v800_v0  ;;  %v658_v12 = vld [vmem:[#allocation7 + $0x20] sm:$0xff]   ;;  %v653_v13 = vld [vmem:[#allocation5 + $0x38] sm:$0xff]   ;;  %v89_v14 = vld [vmem:[#allocation2] sm:$0xff]  ;;  %vm327_vm1 = vcmp.lt.s32.totalorder %v326_v36, 32 }
  0x4f   :  { %v90_v15 = vld [vmem:[#allocation2 + $0x8] sm:$0xff]  ;;  %v659_v16 = vld [vmem:[#allocation7 + $0x28] sm:$0xff]   ;;  %v660_v18 = vld [vmem:[#allocation7 + $0x30] sm:$0xff]  }
  0x50   :  { %v91_v17 = vpack.c.bf16 %v90_v15, %v89_v14  ;;  %v661_v19 = vld [vmem:[#allocation7 + $0x38] sm:$0xff]   ;;  %v510_v20 = vld [vmem:[%s987_s2] ss:$0 sm:$0xff]  ;;  %v662_v47 = vld [vmem:[#allocation8] sm:$0xff]  }
  0x51   :  { %578 = vmatpush3.bf16.msra.mxu0 %v647_v2  ;;  %598 = vmatpush3.bf16.msra.mxu1 %v655_v6  ;;  %v519_v28 = vld [vmem:[%s989_s4] ss:$0 sm:$0xff]  ;;  %v663_v48 = vld [vmem:[#allocation8 + $0x8] sm:$0xff]   ;;  %v665_v50 = vld [vmem:[#allocation8 + $0x18] sm:$0xff]  }
  0x52   :  { %579 = vmatprep.subr.bf16.mxu0 %v800_v0  ;;  %599 = vmatprep.subr.bf16.mxu1 %v800_v0  ;;  %v664_v49 = vld [vmem:[#allocation8 + $0x10] sm:$0xff]   ;;  %v666_v51 = vld [vmem:[#allocation8 + $0x20] sm:$0xff]   ;;  %v667_v52 = vld [vmem:[#allocation8 + $0x28] sm:$0xff]  }
  0x53   :  { %v668_v53 = vld [vmem:[#allocation8 + $0x30] sm:$0xff]   ;;  %v669_v54 = vld [vmem:[#allocation8 + $0x38] sm:$0xff]  }
  0x54   :  { %v528_v62 = vld [vmem:[%s990_s5] ss:$0 sm:$0xff] }
  0x55   :  { %580 = vmatpush3.bf16.msra.mxu0 %v648_v3  ;;  %600 = vmatpush3.bf16.msra.mxu1 %v656_v8  ;;  %v529_v1 = vld [vmem:[%s991_s6] ss:$0 sm:$0xff]  ;;  %s802_s6 = smov [#allocation10]  }
  0x56   :  { %581 = vmatprep.subr.bf16.mxu0 %v800_v0  ;;  %601 = vmatprep.subr.bf16.mxu1 %v800_v0  ;;  %s496_s26 = sshll.u32 %s802_s6, 4  ;;  %s497_s26 = int_to_ptr.vmem [resolvable:$true] %s496_s26 }
  0x57   :  { %s762_s27 = scalar_lea.vmem %s497_s26, 128  ;;  %p767_p5 = scmp.lt.s32.totalorder %s497_s26, %s497_s26 }
  0x58   :  { %p763_p4 = scmp.ne.s32.totalorder %s497_s26, %s762_s27  ;;  %p768_p6 = scmp.lt.s32.totalorder %s762_s27, %s762_s27 }
  0x59   :  { %582 = vmatpush3.bf16.msra.mxu0 %v649_v5  ;;  %602 = vmatpush3.bf16.msra.mxu1 %v657_v10 }
  0x5a   :  { %583 = vmatprep.subr.bf16.mxu0 %v800_v0  ;;  %603 = vmatprep.subr.bf16.mxu1 %v800_v0  ;;  %p769_p7 = por %p768_p6, %p767_p5 }
  0x5c   :  { %p770_p8 = pnand %p769_p7, %p763_p4 }
  0x5d   :  { %584 = vmatpush3.bf16.msra.mxu0 %v650_v7  ;;  %604 = vmatpush3.bf16.msra.mxu1 %v658_v12  ;;  %v530_v12 = vld [vmem:[%s993_s8] ss:$0 sm:$0xff] }
  0x5e   :  { %585 = vmatprep.subr.bf16.mxu0 %v800_v0  ;;  %605 = vmatprep.subr.bf16.mxu1 %v800_v0 }
  0x61   :  { %586 = vmatpush3.bf16.msra.mxu0 %v651_v9  ;;  %606 = vmatpush3.bf16.msra.mxu1 %v659_v16 }
  0x62   :  { %587 = vmatprep.subr.bf16.mxu0 %v800_v0  ;;  %607 = vmatprep.subr.bf16.mxu1 %v800_v0 }
  0x65   :  { %588 = vmatpush3.bf16.msra.mxu0 %v652_v11  ;;  %608 = vmatpush3.bf16.msra.mxu1 %v660_v18 }
  0x66   :  { %589 = vmatprep.subr.bf16.mxu0 %v800_v0  ;;  %609 = vmatprep.subr.bf16.mxu1 %v800_v0 }
  0x69   :  { %590 = vmatpush3.bf16.msra.mxu0 %v653_v13  ;;  %610 = vmatpush3.bf16.msra.mxu1 %v661_v19 }
  0x6a   :  { %615 = vmatprep.subr.bf16.mxu0 %v800_v0 }
  0x6c   :  { %592 = vmatmul.mubr.bf16.vlgmr.msra.gmra.mrb[0].mxu0 %v91_v17 }
  0x6d   :  { %631 = vmatprep.mubr.msk.bf16.mxu0 %vm801_vm0, %v800_v0  ;;  %616 = vmatpush3.bf16.msra.mxu0 %v662_v47 }
  0x6e   :  { %617 = vmatprep.subr.bf16.mxu0 %v800_v0 }
  0x71   :  { %618 = vmatpush3.bf16.msra.mxu0 %v663_v48 }
  0x72   :  { %619 = vmatprep.subr.bf16.mxu0 %v800_v0 }
  0x75   :  { %620 = vmatpush3.bf16.msra.mxu0 %v664_v49 }
  0x76   :  { %621 = vmatprep.subr.bf16.mxu0 %v800_v0 }
  0x79   :  { %622 = vmatpush3.bf16.msra.mxu0 %v665_v50 }
  0x7a   :  { %623 = vmatprep.subr.bf16.mxu0 %v800_v0 }
  0x7d   :  { %624 = vmatpush3.bf16.msra.mxu0 %v666_v51 }
  0x7e   :  { %625 = vmatprep.subr.bf16.mxu0 %v800_v0 }
  0x81   :  { %626 = vmatpush3.bf16.msra.mxu0 %v667_v52 }
  0x82   :  { %627 = vmatprep.subr.bf16.mxu0 %v800_v0 }
  0x85   :  { %628 = vmatpush3.bf16.msra.mxu0 %v668_v53 }
  0x86   :  { %629 = vmatprep.subr.bf16.mxu0 %v800_v0 }
  0x89   :  { %630 = vmatpush3.bf16.msra.mxu0 %v669_v54 }
 0x13f   :  { %v197_v21 = vpop.f32.mrb[0].mxu0 }
 0x140   :  { %v593_v22 = vpop.f32.mrb[1].mxu0  ;;  %v943_v24 = vadd.f32 %v510_v20, %v197_v21 }
 0x141   :  { %v200_v23 = vpop.f32.mrb[2].mxu0 }
 0x142   :  { %v945_v25 = vadd.f32 %v510_v20, %v200_v23  ;;  %v594_v26 = vpop.f32.mrb[3].mxu0 }
 0x144   :  { %v204_v27 = vpack.c.bf16 %v945_v25, %v943_v24 }
 0x146   :  { %612 = vmatmul.mubr.bf16.vlgmr.msra.gmra.mrb[0].mxu1 %v204_v27 }
 0x219   :  { %v310_v29 = vpop.f32.mrb[0].mxu1 }
 0x21a   :  { %v311_v30 = vadd.f32 %v519_v28, %v310_v29  ;;  %v613_v31 = vpop.f32.mrb[1].mxu1 }
 0x21b   :  { %v313_v32 = vpop.f32.mrb[2].mxu1 }
 0x21c   :  { %317 = vadd.xlane.f32.xlu0 %v311_v30  ;;  %v614_v33 = vpop.f32.mrb[3].mxu1  ;;  %v314_v34 = vadd.f32 %v519_v28, %v313_v32 }
 0x220   :  { %319 = vadd.xlane.f32.xlu0 %v314_v34 }
 0x2a9   :  { %v318_v37 = vpop.xlane.xlu0 %317 }
 0x2aa   :  { %v321_v38 = vmul.f32 0.03125, %v318_v37 }
 0x2ac   :  { %v323_v39 = vsub.f32 %v311_v30, %v321_v38 }
 0x2ad   :  { %v320_v40 = vpop.xlane.xlu0 %319 }
 0x2ae   :  { %v322_v41 = vmul.f32 0.03125, %v320_v40  ;;  %v330_v42 = vsel %vm327_vm1, %v323_v39, 0.0 }
 0x2af   :  { %v332_v43 = vmul.f32 %v330_v42, %v330_v42 }
 0x2b0   :  { %v324_v44 = vsub.f32 %v314_v34, %v322_v41 }
 0x2b1   :  { %334 = vadd.xlane.f32.xlu1 %v332_v43 }
 0x2b2   :  { %v331_v45 = vsel %vm327_vm1, %v324_v44, 0.0 }
 0x2b3   :  { %v333_v46 = vmul.f32 %v331_v45, %v331_v45 }
 0x2b5   :  { %336 = vadd.xlane.f32.xlu1 %v333_v46 }
 0x33e   :  { %v335_v55 = vpop.xlane.xlu1 %334 }
 0x33f   :  { %v338_v56 = vmul.f32 0.03125, %v335_v55 }
 0x341   :  { %v340_v57 = vadd.f32 1e-05, %v338_v56 }
 0x342   :  { %v337_v58 = vpop.xlane.xlu1 %336 }
 0x343   :  { %670 = vrsqrt.f32 %v340_v57  ;;  %v339_v59 = vmul.f32 0.03125, %v337_v58 }
 0x345   :  { %v341_v60 = vadd.f32 1e-05, %v339_v59 }
 0x347   :  { %672 = vrsqrt.f32 %v341_v60 }
 0x34d   :  { %v671_v61 = vpop.eup %670 }
 0x34e   :  { %v344_v63 = vmul.f32 %v671_v61, %v330_v42 }
 0x350   :  { %v353_v0 = vmul.f32 %v528_v62, %v344_v63 }
 0x351   :  { %v673_v2 = vpop.eup %672 }
 0x352   :  { %v345_v3 = vmul.f32 %v673_v2, %v331_v45  ;;  %v362_v4 = vadd.f32 %v529_v1, %v353_v0 }
 0x354   :  { %v354_v5 = vmul.f32 %v528_v62, %v345_v3  ;;  %v364_v7 = vmax.f32 %v362_v4, 0.0 }
 0x356   :  { %v363_v6 = vadd.f32 %v529_v1, %v354_v5  ;;  %v366_v9 = vadd.f32 %v364_v7, %v943_v24 }
 0x358   :  { %v365_v8 = vmax.f32 %v363_v6, 0.0 }
 0x35a   :  { %v367_v10 = vadd.f32 %v365_v8, %v945_v25 }
 0x35c   :  { %v368_v11 = vpack.c.bf16 %v367_v10, %v366_v9 }
 0x35e   :  { %632 = vmatmul.mubr.bf16.vlgmr.msra.gmra.mrb[4].mxu0 %v368_v11 }
 0x431   :  { %v474_v13 = vpop.f32.mrb[4].mxu0 }
 0x432   :  { %v633_v14 = vpop.f32.mrb[5].mxu0  ;;  %v475_v16 = vadd.f32 %v530_v12, %v474_v13 }
 0x433   :  { %v477_v15 = vpop.f32.mrb[6].mxu0 }
 0x434   :  { %v478_v17 = vadd.f32 %v530_v12, %v477_v15  ;;  %v634_v18 = vpop.f32.mrb[7].mxu0 }
 0x436   :  { %v546_v19 = vpack.c.bf16 %v478_v17, %v475_v16 }
 0x438   :  { %547 = vst [vmem:[#allocation10] sm:$0xff] %v546_v19  }
 0x439   :  { %773 = shalt.err (!%p770_p8)
}
 0x43a   :  { %s774_s0 = scalar_lea.hbm %s994_s9, 128 }
 0x43b   :  { %p775_p9 = scmp.ne.s32.totalorder %s994_s9, %s774_s0  ;;  %p778_p10 = scmp.lt.u32.totalorder %s774_s0, %s994_s9 }
 0x43d   :  { %p780_p11 = pnand %p778_p10, %p775_p9 }
 0x43f   :  { %783 = shalt.err (!%p780_p11)
}
 0x440   :  { %502 = dma.vmem_to_hbm [thread:$0]  %s497_s26, 128, %s994_s9, [#allocation4], %s793_s19, %s793_s19, %s794_s20  }
 0x441   :  { %790 = dma.done.wait [#allocation4], 128  }
 0x442   :  { %791 = vsyncadd [#allocation4], 4294967168 }
 0x443   :  { %506 = vsyncpa [#allocation3], 1 }
 0x444   :  { %507 = vsyncpa [#allocation6], 1 }
 0x445   :  { %508 = vsyncpa [#allocation9], 1 }
 0x446   :  { %509 = vsyncpa [#allocation4], 1 }

</bundles_post_ra>
